<compile_context>
chip_gen: v5e
topology: v5e:2x2
jax: 0.10.0
libtpu: 0.0.40
codegen_flags: <defaults>
</compile_context>

<pallas_src>
import functools

import jax
import jax.numpy as jnp
from jax.experimental import pallas as pl
from jax.experimental.pallas import tpu as pltpu

NEG_SLOPE = 0.01  # PyTorch nn.LeakyReLU default negative_slope


def _disc_kernel(x_ref, w1_ref, b1_ref, w2_ref, b2_ref, o_ref):
    """Fused Linear->LeakyReLU->Linear->Sigmoid for one batch tile."""
    # Linear 1: (tb, D) @ (D, H) on the MXU with f32 accumulation.
    h = jnp.dot(x_ref[...], w1_ref[...], preferred_element_type=jnp.float32)
    h = h + b1_ref[...]
    # LeakyReLU in f32 on the VPU (v5e has no bf16 VPU).
    h = jnp.where(h > 0, h, NEG_SLOPE * h)
    # Linear 2 (out_features = 1): VPU multiply + cross-lane (XLU) reduction
    # instead of a 1-column MXU matmul. w2 is lane-dense (1, H). b2 via SMEM.
    z = jnp.sum(h * w2_ref[...], axis=-1, keepdims=True) + b2_ref[0]
    o_ref[...] = jax.nn.sigmoid(z).astype(o_ref.dtype)


@functools.partial(jax.jit, static_argnames=("tile_b", "compute_dtype"))
def discriminator_forward(x, w1, b1, w2, b2, *, tile_b=256, compute_dtype=None):
    """x: (B, D); w1: (D, H); b1: (H,); w2: (H, 1); b2: (1,). Returns (B, 1).

    compute_dtype: optional dtype (e.g. jnp.bfloat16) for the Linear-1 operand
    stream; accumulation and the epilogue stay in f32.
    """
    B, D = x.shape
    H = w1.shape[1]
    out_dtype = x.dtype

    tb = min(tile_b, B)
    assert B % tb == 0, (B, tb)

    if compute_dtype is not None:
        x = x.astype(compute_dtype)
        w1 = w1.astype(compute_dtype)

    b1_2d = b1.reshape(1, H).astype(jnp.float32)
    w2_row = w2.reshape(1, H).astype(jnp.float32)   # lane-dense row vector
    b2_1d = b2.reshape(1).astype(jnp.float32)       # scalar via SMEM

    return pl.pallas_call(
        _disc_kernel,
        out_shape=jax.ShapeDtypeStruct((B, 1), out_dtype),
        grid=(B // tb,),
        in_specs=[
            pl.BlockSpec((tb, D), lambda i: (i, 0)),    # x batch tile
            pl.BlockSpec((D, H), lambda i: (0, 0)),     # full W1 (resident)
            pl.BlockSpec((1, H), lambda i: (0, 0)),     # b1 (resident)
            pl.BlockSpec((1, H), lambda i: (0, 0)),     # w2 as (1, H) (resident)
            pl.BlockSpec(memory_space=pltpu.MemorySpace.SMEM),  # b2 scalar
        ],
        out_specs=pl.BlockSpec((tb, 1), lambda i: (i, 0)),
        compiler_params=pltpu.CompilerParams(
            dimension_semantics=("parallel",),  # batch tiles are independent
        ),
    )(x, w1, b1_2d, w2_row, b2_1d)


def reference_forward(x, w1, b1, w2, b2):
    h = x @ w1 + b1
    h = jnp.where(h > 0, h, NEG_SLOPE * h)
    z = h @ w2 + b2
    return jax.nn.sigmoid(z)


if __name__ == "__main__":
    # Small, module-consistent shapes: x_dim=24, attr_dim=8 -> D=32, hidden=4096
    B, X_DIM, ATTR_DIM, H = 8, 24, 8, 4096
    D = X_DIM + ATTR_DIM

    key = jax.random.PRNGKey(0)
    kx, kw1, kb1, kw2, kb2 = jax.random.split(key, 5)

    x = jax.random.normal(kx, (B, D), dtype=jnp.float32)
    # PyTorch W1 is (4096, D); stored pre-transposed as (D, 4096).
    w1 = jax.random.normal(kw1, (D, H), dtype=jnp.float32) * 0.05
    b1 = jax.random.normal(kb1, (H,), dtype=jnp.float32) * 0.05
    w2 = jax.random.normal(kw2, (H, 1), dtype=jnp.float32) * 0.05
    b2 = jax.random.normal(kb2, (1,), dtype=jnp.float32) * 0.05

    ref = reference_forward(x, w1, b1, w2, b2)

    # f32 path (exact match to the PyTorch forward semantics).
    out = jax.block_until_ready(discriminator_forward(x, w1, b1, w2, b2))
    assert out.shape == (B, 1), out.shape
    assert jnp.allclose(out, ref, atol=1e-4, rtol=1e-4), (
        f"max err {float(jnp.max(jnp.abs(out - ref)))}"
    )

    # bf16 operand stream for Linear-1 (v6e/v7x HBM + MXU win); f32 accumulate
    # and f32 epilogue, so the sigmoid output stays close to the f32 reference.
    out_bf16 = jax.block_until_ready(
        discriminator_forward(x, w1, b1, w2, b2, compute_dtype=jnp.bfloat16)
    )
    assert jnp.allclose(out_bf16, ref, atol=5e-2), (
        f"bf16 max err {float(jnp.max(jnp.abs(out_bf16 - ref)))}"
    )

    print("KERNEL_OK")
</pallas_src>

<mosaic_0001>
module attributes {stable_mosaic.version = 11 : i64} {
  func.func @_disc_kernel(%arg0: i32, %arg1: memref<8x32xf32, #tpu.memory_space<vmem>>, %arg2: memref<32x4096xf32, #tpu.memory_space<vmem>>, %arg3: memref<1x4096xf32, #tpu.memory_space<vmem>>, %arg4: memref<1x4096xf32, #tpu.memory_space<vmem>>, %arg5: memref<1xf32, #tpu.memory_space<smem>>, %arg6: memref<8x1xf32, #tpu.memory_space<vmem>>) attributes {dimension_semantics = [#tpu.dimension_semantics<parallel>], iteration_bounds = array<i64: 1>, scalar_prefetch = 0 : i64, scratch_operands = 0 : i64, tpu.core_type = #tpu.core_type<tc>, window_params = [{transform_indices = @transform_0, window_bounds = array<i64: 8, 32>}, {pipeline_mode = #tpu.pipeline_mode<synchronous>, transform_indices = @transform_1, window_bounds = array<i64: 32, 4096>}, {pipeline_mode = #tpu.pipeline_mode<synchronous>, transform_indices = @transform_2, window_bounds = array<i64: 1, 4096>}, {pipeline_mode = #tpu.pipeline_mode<synchronous>, transform_indices = @transform_3, window_bounds = array<i64: 1, 4096>}, {transform_indices = @transform_4, window_bounds = array<i64: 1>}, {transform_indices = @transform_5, window_bounds = array<i64: 8, 1>}]} {
    %c0 = arith.constant 0 : index
    %c0_0 = arith.constant 0 : index
    %0 = vector.load %arg1[%c0, %c0_0] : memref<8x32xf32, #tpu.memory_space<vmem>>, vector<8x32xf32>
    %c0_1 = arith.constant 0 : index
    %c0_2 = arith.constant 0 : index
    %1 = vector.load %arg2[%c0_1, %c0_2] : memref<32x4096xf32, #tpu.memory_space<vmem>>, vector<32x4096xf32>
    %cst = arith.constant dense<0.000000e+00> : vector<8x4096xf32>
    %2 = tpu.matmul %0, %1, %cst {dimension_numbers = #tpu.dot_dimension_numbers<[1], [0], [0], [1], [0, 0, 1, 1], [], []>} : vector<8x32xf32>, vector<32x4096xf32>, vector<8x4096xf32> -> vector<8x4096xf32>
    %c0_3 = arith.constant 0 : index
    %c0_4 = arith.constant 0 : index
    %3 = vector.load %arg3[%c0_3, %c0_4] : memref<1x4096xf32, #tpu.memory_space<vmem>>, vector<1x4096xf32>
    %4 = vector.broadcast %3 : vector<1x4096xf32> to vector<8x4096xf32>
    %5 = arith.addf %2, %4 : vector<8x4096xf32>
    %cst_5 = arith.constant 0.000000e+00 : f32
    %6 = vector.broadcast %cst_5 : f32 to vector<8x4096xf32>
    %7 = arith.cmpf ogt, %5, %6 : vector<8x4096xf32>
    %cst_6 = arith.constant 0.00999999977 : f32
    %8 = vector.broadcast %cst_6 : f32 to vector<8x4096xf32>
    %9 = arith.mulf %8, %5 : vector<8x4096xf32>
    %10 = arith.select %7, %5, %9 : vector<8x4096xi1>, vector<8x4096xf32>
    %c0_7 = arith.constant 0 : index
    %c0_8 = arith.constant 0 : index
    %11 = vector.load %arg4[%c0_7, %c0_8] : memref<1x4096xf32, #tpu.memory_space<vmem>>, vector<1x4096xf32>
    %12 = vector.broadcast %11 : vector<1x4096xf32> to vector<8x4096xf32>
    %13 = arith.mulf %10, %12 : vector<8x4096xf32>
    %cst_9 = arith.constant dense<0.000000e+00> : vector<8xf32>
    %14 = vector.multi_reduction <add>, %13, %cst_9 [1] : vector<8x4096xf32> to vector<8xf32>
    %15 = vector.shape_cast %14 : vector<8xf32> to vector<8x1xf32>
    %c0_10 = arith.constant 0 : index
    %16 = memref.load %arg5[%c0_10] : memref<1xf32, #tpu.memory_space<smem>>
    %17 = vector.broadcast %16 : f32 to vector<8x1xf32>
    %18 = arith.addf %15, %17 : vector<8x1xf32>
    %19 = arith.negf %18 : vector<8x1xf32>
    %20 = math.exp %19 : vector<8x1xf32>
    %cst_11 = arith.constant 1.000000e+00 : f32
    %21 = vector.broadcast %cst_11 : f32 to vector<8x1xf32>
    %22 = arith.addf %21, %20 : vector<8x1xf32>
    %23 = arith.divf %21, %22 : vector<8x1xf32>
    %c0_12 = arith.constant 0 : index
    %c0_13 = arith.constant 0 : index
    %24 = vector.load %arg6[%c0_12, %c0_13] : memref<8x1xf32, #tpu.memory_space<vmem>>, vector<8x1xf32>
    tpu.vector_store %arg6[%c0_12, %c0_13], %23 {strides = array<i32>} : memref<8x1xf32, #tpu.memory_space<vmem>>, vector<8x1xf32>,
    return
  }
  func.func @transform_0(%arg0: i32) -> (i32, i32) {
    %c0_i32 = arith.constant 0 : i32
    %c0_i32_0 = arith.constant 0 : i32
    return %arg0, %c0_i32 : i32, i32
  }
  func.func @transform_1(%arg0: i32) -> (i32, i32) {
    %c0_i32 = arith.constant 0 : i32
    %c0_i32_0 = arith.constant 0 : i32
    %c0_i32_1 = arith.constant 0 : i32
    return %c0_i32, %c0_i32_0 : i32, i32
  }
  func.func @transform_2(%arg0: i32) -> (i32, i32) {
    %c0_i32 = arith.constant 0 : i32
    %c0_i32_0 = arith.constant 0 : i32
    %c0_i32_1 = arith.constant 0 : i32
    return %c0_i32, %c0_i32_0 : i32, i32
  }
  func.func @transform_3(%arg0: i32) -> (i32, i32) {
    %c0_i32 = arith.constant 0 : i32
    %c0_i32_0 = arith.constant 0 : i32
    %c0_i32_1 = arith.constant 0 : i32
    return %c0_i32, %c0_i32_0 : i32, i32
  }
  func.func @transform_4(%arg0: i32) -> i32 {
    %c0_i32 = arith.constant 0 : i32
    %c0_i32_0 = arith.constant 0 : i32
    return %c0_i32 : i32
  }
  func.func @transform_5(%arg0: i32) -> (i32, i32) {
    %c0_i32 = arith.constant 0 : i32
    %c0_i32_0 = arith.constant 0 : i32
    return %arg0, %c0_i32 : i32, i32
  }
}

</mosaic_0001>

<bundles_post_ra>
// kernel: discriminator_forward.1
= control target key start
LH: loop header
LB: loop body
LE: loop exit
PB: predicated region body
PF: predicated region fallthrough
CT: control target
= control target key end

     0   :  { %11 = vsyncpa [#allocation4], 0  ;;  %s1522_s0 = inlined_call_operand.hbm [shape: f32[8,32], index: 0, kind: input, shape index: {}]   ;;  %s1523_s1 = inlined_call_operand.hbm [shape: f32[32,4096], index: 1, kind: input, shape index: {}]   ;;  %s1524_s2 = inlined_call_operand.hbm [shape: f32[1,4096], index: 2, kind: input, shape index: {}]   ;;  %s1525_s3 = inlined_call_operand.hbm [shape: f32[1,4096], index: 3, kind: input, shape index: {}]   ;;  %s1526_s4 = inlined_call_operand.<no memory space> [shape: f32[1], index: 4, kind: input, shape index: {}]   ;;  %s1527_s5 = inlined_call_operand.vmem [shape: f32[8,1], index: 5, kind: output, shape index: {}]  }
   0x1   :  { %12 = vsyncpa [#allocation6], 0  ;;  %s29_s20 = sshll.u32 %s1523_s1, 4  ;;  %s30_s20 = int_to_ptr.hbm [resolvable:$true] %s29_s20 }
   0x2   :  { %13 = vsyncpa [#allocation9], 0  ;;  %s1332_s21 = smov [#allocation5]   ;;  %s19_s25 = sshll.u32 %s1522_s0, 4  ;;  %s20_s25 = int_to_ptr.hbm [resolvable:$true] %s19_s25 }
   0x3   :  { %s31_s22 = sshll.u32 %s1332_s21, 4  ;;  %s1333_s26 = smov 4096   ;;  %s32_s22 = int_to_ptr.vmem [resolvable:$true] %s31_s22 }
   0x4   :  { %s1334_s27 = smov 256   ;;  %s1335_s28 = smov [#allocation3]  }
   0x5   :  { %37 = dma.hbm_to_vmem [thread:$0]  %s30_s20, 16384, %s32_s22, [#allocation6], %s1333_s26, %s1333_s26, %s1334_s27  }
   0x6   :  { %s21_s29 = sshll.u32 %s1335_s28, 4  ;;  %s43_s7 = sshll.u32 %s1524_s2, 4  ;;  %s22_s29 = int_to_ptr.vmem [resolvable:$true] %s21_s29  ;;  %s44_s7 = int_to_ptr.hbm [resolvable:$true] %s43_s7 }
   0x7   :  { %24 = dma.hbm_to_vmem [thread:$0]  %s20_s25, 128, %s22_s29, [#allocation4]  }
   0x8   :  { %s54_s9 = sshll.u32 %s1525_s3, 4  ;;  %s1336_s10 = smov [#allocation7]   ;;  %s55_s9 = int_to_ptr.hbm [resolvable:$true] %s54_s9 }
   0x9   :  { %s45_s11 = sshll.u32 %s1336_s10, 4  ;;  %s1337_s0 = smov [#allocation8]   ;;  %s46_s11 = int_to_ptr.vmem [resolvable:$true] %s45_s11 }
   0xa   :  { %48 = dma.hbm_to_vmem [thread:$0]  %s44_s7, 512, %s46_s11, [#allocation6]  }
   0xb   :  { %s56_s12 = sshll.u32 %s1337_s0, 4  ;;  %s57_s12 = int_to_ptr.vmem [resolvable:$true] %s56_s12 }
   0xc   :  { %59 = dma.hbm_to_vmem [thread:$0]  %s55_s9, 512, %s57_s12, [#allocation9]  }
   0xd   :  { %1326 = dma.done.wait [#allocation4], 128  }
   0xe   :  { %1327 = vsyncadd [#allocation4], 4294967168 }
   0xf   :  { %1328 = dma.done.wait [#allocation6], 16896  }
  0x10   :  { %1329 = vsyncadd [#allocation6], 4294950400 }
  0x11   :  { %1330 = dma.done.wait [#allocation9], 512  }
  0x12   :  { %1331 = vsyncadd [#allocation9], 4294966784  ;;  %v175_v0 = vld [vmem:[#allocation5 + $0x300] sm:$0xff]  ;;  %v176_v1 = vld [vmem:[#allocation5 + $0x308] sm:$0xff]  ;;  %vm279_vm0 = vcmask 261120  }
  0x13   :  { %v177_v2 = vld [vmem:[#allocation5 + $0x310] sm:$0xff]  ;;  %295 = vmatpush.msra.mxu0 %v175_v0  ;;  %315 = vmatpush.msra.mxu1 %v176_v1  ;;  %v178_v3 = vld [vmem:[#allocation5 + $0x318] sm:$0xff]  ;;  %v143_v4 = vld [vmem:[#allocation5 + $0x200] sm:$0xff] }
  0x14   :  { %v144_v5 = vld [vmem:[#allocation5 + $0x208] sm:$0xff]  ;;  %335 = vmatpush.msra.mxu2 %v177_v2  ;;  %355 = vmatpush.msra.mxu3 %v178_v3  ;;  %v145_v6 = vld [vmem:[#allocation5 + $0x210] sm:$0xff]  ;;  %v146_v7 = vld [vmem:[#allocation5 + $0x218] sm:$0xff] }
  0x15   :  { %v111_v8 = vld [vmem:[#allocation5 + $0x100] sm:$0xff]  ;;  %296 = vmatpush.msra.mxu0 %v143_v4  ;;  %316 = vmatpush.msra.mxu1 %v144_v5  ;;  %v112_v9 = vld [vmem:[#allocation5 + $0x108] sm:$0xff]  ;;  %v113_v10 = vld [vmem:[#allocation5 + $0x110] sm:$0xff] }
  0x16   :  { %v114_v11 = vld [vmem:[#allocation5 + $0x118] sm:$0xff]  ;;  %336 = vmatpush.msra.mxu2 %v145_v6  ;;  %356 = vmatpush.msra.mxu3 %v146_v7  ;;  %v79_v12 = vld [vmem:[#allocation5] sm:$0xff]  ;;  %v80_v13 = vld [vmem:[#allocation5 + $0x8] sm:$0xff] }
  0x17   :  { %297 = vmatpush.msra.mxu0 %v111_v8  ;;  %317 = vmatpush.msra.mxu1 %v112_v9  ;;  %v81_v14 = vld [vmem:[#allocation5 + $0x10] sm:$0xff]  ;;  %v82_v15 = vld [vmem:[#allocation5 + $0x18] sm:$0xff]  ;;  %v179_v18 = vld [vmem:[#allocation5 + $0x320] sm:$0xff] }
  0x18   :  { %337 = vmatpush.msra.mxu2 %v113_v10  ;;  %357 = vmatpush.msra.mxu3 %v114_v11  ;;  %v1380_v16 = vld [vmem:[#allocation3] sm:$0xff]  ;;  %v181_v17 = vld [vmem:[#allocation5 + $0x330] sm:$0xff]  ;;  %v180_v20 = vld [vmem:[#allocation5 + $0x328] sm:$0xff] }
  0x19   :  { %298 = vmatpush.msra.mxu0 %v79_v12  ;;  %318 = vmatpush.msra.mxu1 %v80_v13  ;;  %v182_v19 = vld [vmem:[#allocation5 + $0x338] sm:$0xff]  ;;  %v149_v21 = vld [vmem:[#allocation5 + $0x230] sm:$0xff]  ;;  %v147_v22 = vld [vmem:[#allocation5 + $0x220] sm:$0xff] }
  0x1a   :  { %338 = vmatpush.msra.mxu2 %v81_v14  ;;  %358 = vmatpush.msra.mxu3 %v82_v15  ;;  %v150_v23 = vld [vmem:[#allocation5 + $0x238] sm:$0xff]  ;;  %v148_v24 = vld [vmem:[#allocation5 + $0x228] sm:$0xff]  ;;  %v117_v25 = vld [vmem:[#allocation5 + $0x130] sm:$0xff] }
  0x1b   :  { %1187 = vmatmul.msk.f32.vlgmr.msra.gmra.mxu0 %vm279_vm0, %v1380_v16  ;;  %1188 = vmatmul.msk.f32.vlgmr.msra.gmra.mxu1 %vm279_vm0, %v1380_v16  ;;  %v115_v26 = vld [vmem:[#allocation5 + $0x120] sm:$0xff]  ;;  %v118_v27 = vld [vmem:[#allocation5 + $0x138] sm:$0xff]  ;;  %v116_v28 = vld [vmem:[#allocation5 + $0x128] sm:$0xff] }
  0x1c   :  { %1189 = vmatmul.msk.f32.vlgmr.msra.gmra.mxu2 %vm279_vm0, %v1380_v16  ;;  %1190 = vmatmul.msk.f32.vlgmr.msra.gmra.mxu3 %vm279_vm0, %v1380_v16  ;;  %v85_v29 = vld [vmem:[#allocation5 + $0x30] sm:$0xff]  ;;  %v83_v30 = vld [vmem:[#allocation5 + $0x20] sm:$0xff]  ;;  %v86_v31 = vld [vmem:[#allocation5 + $0x38] sm:$0xff] }
  0x1d   :  { %415 = vmatpush.msrb.mxu2 %v181_v17  ;;  %375 = vmatpush.msrb.mxu0 %v179_v18  ;;  %v185_v32 = vld [vmem:[#allocation5 + $0x350] sm:$0xff]  ;;  %v84_v33 = vld [vmem:[#allocation5 + $0x28] sm:$0xff]  ;;  %v183_v34 = vld [vmem:[#allocation5 + $0x340] sm:$0xff] }
  0x1e   :  { %435 = vmatpush.msrb.mxu3 %v182_v19  ;;  %395 = vmatpush.msrb.mxu1 %v180_v20  ;;  %v186_v35 = vld [vmem:[#allocation5 + $0x358] sm:$0xff]  ;;  %v153_v36 = vld [vmem:[#allocation5 + $0x250] sm:$0xff]  ;;  %v151_v37 = vld [vmem:[#allocation5 + $0x240] sm:$0xff] }
  0x1f   :  { %416 = vmatpush.msrb.mxu2 %v149_v21  ;;  %376 = vmatpush.msrb.mxu0 %v147_v22  ;;  %v184_v38 = vld [vmem:[#allocation5 + $0x348] sm:$0xff]  ;;  %v154_v39 = vld [vmem:[#allocation5 + $0x258] sm:$0xff]  ;;  %v121_v40 = vld [vmem:[#allocation5 + $0x150] sm:$0xff] }
  0x20   :  { %436 = vmatpush.msrb.mxu3 %v150_v23  ;;  %396 = vmatpush.msrb.mxu1 %v148_v24  ;;  %v119_v41 = vld [vmem:[#allocation5 + $0x140] sm:$0xff]  ;;  %v152_v42 = vld [vmem:[#allocation5 + $0x248] sm:$0xff]  ;;  %v122_v43 = vld [vmem:[#allocation5 + $0x158] sm:$0xff] }
  0x21   :  { %417 = vmatpush.msrb.mxu2 %v117_v25  ;;  %377 = vmatpush.msrb.mxu0 %v115_v26  ;;  %v89_v44 = vld [vmem:[#allocation5 + $0x50] sm:$0xff]  ;;  %v87_v45 = vld [vmem:[#allocation5 + $0x40] sm:$0xff]  ;;  %v120_v46 = vld [vmem:[#allocation5 + $0x148] sm:$0xff] }
  0x22   :  { %437 = vmatpush.msrb.mxu3 %v118_v27  ;;  %397 = vmatpush.msrb.mxu1 %v116_v28  ;;  %v90_v47 = vld [vmem:[#allocation5 + $0x58] sm:$0xff]  ;;  %v189_v48 = vld [vmem:[#allocation5 + $0x370] sm:$0xff]  ;;  %v88_v49 = vld [vmem:[#allocation5 + $0x48] sm:$0xff] }
  0x23   :  { %418 = vmatpush.msrb.mxu2 %v85_v29  ;;  %378 = vmatpush.msrb.mxu0 %v83_v30  ;;  %v187_v50 = vld [vmem:[#allocation5 + $0x360] sm:$0xff]  ;;  %v190_v51 = vld [vmem:[#allocation5 + $0x378] sm:$0xff]  ;;  %v157_v52 = vld [vmem:[#allocation5 + $0x270] sm:$0xff] }
  0x24   :  { %438 = vmatpush.msrb.mxu3 %v86_v31  ;;  %1191 = vmatmul.msk.f32.vlgmr.msrb.gmra.mxu0 %vm279_vm0, %v1380_v16  ;;  %v155_v53 = vld [vmem:[#allocation5 + $0x260] sm:$0xff]  ;;  %v188_v54 = vld [vmem:[#allocation5 + $0x368] sm:$0xff]  ;;  %v158_v55 = vld [vmem:[#allocation5 + $0x278] sm:$0xff] }
  0x25   :  { %1193 = vmatmul.msk.f32.vlgmr.msrb.gmra.mxu2 %vm279_vm0, %v1380_v16  ;;  %1194 = vmatmul.msk.f32.vlgmr.msrb.gmra.mxu3 %vm279_vm0, %v1380_v16  ;;  %v125_v56 = vld [vmem:[#allocation5 + $0x170] sm:$0xff]  ;;  %v123_v57 = vld [vmem:[#allocation5 + $0x160] sm:$0xff]  ;;  %v156_v58 = vld [vmem:[#allocation5 + $0x268] sm:$0xff] }
  0x26   :  { %495 = vmatpush.msra.mxu2 %v185_v32  ;;  %398 = vmatpush.msrb.mxu1 %v84_v33  ;;  %v126_v59 = vld [vmem:[#allocation5 + $0x178] sm:$0xff]  ;;  %v93_v60 = vld [vmem:[#allocation5 + $0x70] sm:$0xff]  ;;  %v91_v61 = vld [vmem:[#allocation5 + $0x60] sm:$0xff] }
  0x27   :  { %455 = vmatpush.msra.mxu0 %v183_v34  ;;  %515 = vmatpush.msra.mxu3 %v186_v35  ;;  %v124_v62 = vld [vmem:[#allocation5 + $0x168] sm:$0xff]  ;;  %v94_v63 = vld [vmem:[#allocation5 + $0x78] sm:$0xff]  ;;  %v193_v0 = vld [vmem:[#allocation5 + $0x390] sm:$0xff] }
  0x28   :  { %1192 = vmatmul.msk.f32.vlgmr.msrb.gmra.mxu1 %vm279_vm0, %v1380_v16  ;;  %496 = vmatpush.msra.mxu2 %v153_v36  ;;  %v92_v1 = vld [vmem:[#allocation5 + $0x68] sm:$0xff]  ;;  %v191_v2 = vld [vmem:[#allocation5 + $0x380] sm:$0xff]  ;;  %v194_v3 = vld [vmem:[#allocation5 + $0x398] sm:$0xff] }
  0x29   :  { %456 = vmatpush.msra.mxu0 %v151_v37  ;;  %475 = vmatpush.msra.mxu1 %v184_v38  ;;  %v161_v4 = vld [vmem:[#allocation5 + $0x290] sm:$0xff]  ;;  %v159_v5 = vld [vmem:[#allocation5 + $0x280] sm:$0xff]  ;;  %v192_v6 = vld [vmem:[#allocation5 + $0x388] sm:$0xff] }
  0x2a   :  { %516 = vmatpush.msra.mxu3 %v154_v39  ;;  %497 = vmatpush.msra.mxu2 %v121_v40  ;;  %v162_v7 = vld [vmem:[#allocation5 + $0x298] sm:$0xff]  ;;  %v129_v8 = vld [vmem:[#allocation5 + $0x190] sm:$0xff]  ;;  %v127_v9 = vld [vmem:[#allocation5 + $0x180] sm:$0xff] }
  0x2b   :  { %457 = vmatpush.msra.mxu0 %v119_v41  ;;  %476 = vmatpush.msra.mxu1 %v152_v42  ;;  %v160_v10 = vld [vmem:[#allocation5 + $0x288] sm:$0xff]  ;;  %v130_v11 = vld [vmem:[#allocation5 + $0x198] sm:$0xff]  ;;  %v97_v12 = vld [vmem:[#allocation5 + $0x90] sm:$0xff] }
  0x2c   :  { %517 = vmatpush.msra.mxu3 %v122_v43  ;;  %498 = vmatpush.msra.mxu2 %v89_v44  ;;  %v95_v13 = vld [vmem:[#allocation5 + $0x80] sm:$0xff]  ;;  %v128_v14 = vld [vmem:[#allocation5 + $0x188] sm:$0xff]  ;;  %v98_v15 = vld [vmem:[#allocation5 + $0x98] sm:$0xff] }
  0x2d   :  { %458 = vmatpush.msra.mxu0 %v87_v45  ;;  %477 = vmatpush.msra.mxu1 %v120_v46  ;;  %v197_v17 = vld [vmem:[#allocation5 + $0x3b0] sm:$0xff]  ;;  %v96_v18 = vld [vmem:[#allocation5 + $0x88] sm:$0xff]  ;;  %v195_v19 = vld [vmem:[#allocation5 + $0x3a0] sm:$0xff] }
  0x2e   :  { %518 = vmatpush.msra.mxu3 %v90_v47  ;;  %1195 = vmatmul.msk.f32.vlgmr.msra.gmra.mxu0 %vm279_vm0, %v1380_v16  ;;  %v198_v20 = vld [vmem:[#allocation5 + $0x3b8] sm:$0xff]  ;;  %v165_v21 = vld [vmem:[#allocation5 + $0x2b0] sm:$0xff]  ;;  %v163_v22 = vld [vmem:[#allocation5 + $0x2a0] sm:$0xff] }
  0x2f   :  { %1197 = vmatmul.msk.f32.vlgmr.msra.gmra.mxu2 %vm279_vm0, %v1380_v16  ;;  %1198 = vmatmul.msk.f32.vlgmr.msra.gmra.mxu3 %vm279_vm0, %v1380_v16  ;;  %v196_v23 = vld [vmem:[#allocation5 + $0x3a8] sm:$0xff]  ;;  %v166_v24 = vld [vmem:[#allocation5 + $0x2b8] sm:$0xff]  ;;  %v133_v25 = vld [vmem:[#allocation5 + $0x1b0] sm:$0xff] }
  0x30   :  { %575 = vmatpush.msrb.mxu2 %v189_v48  ;;  %478 = vmatpush.msra.mxu1 %v88_v49  ;;  %v131_v26 = vld [vmem:[#allocation5 + $0x1a0] sm:$0xff]  ;;  %v164_v27 = vld [vmem:[#allocation5 + $0x2a8] sm:$0xff]  ;;  %v134_v28 = vld [vmem:[#allocation5 + $0x1b8] sm:$0xff] }
  0x31   :  { %535 = vmatpush.msrb.mxu0 %v187_v50  ;;  %595 = vmatpush.msrb.mxu3 %v190_v51  ;;  %v101_v29 = vld [vmem:[#allocation5 + $0xb0] sm:$0xff]  ;;  %v99_v30 = vld [vmem:[#allocation5 + $0xa0] sm:$0xff]  ;;  %v132_v31 = vld [vmem:[#allocation5 + $0x1a8] sm:$0xff] }
  0x32   :  { %1196 = vmatmul.msk.f32.vlgmr.msra.gmra.mxu1 %vm279_vm0, %v1380_v16  ;;  %576 = vmatpush.msrb.mxu2 %v157_v52  ;;  %v102_v32 = vld [vmem:[#allocation5 + $0xb8] sm:$0xff]  ;;  %v201_v33 = vld [vmem:[#allocation5 + $0x3d0] sm:$0xff]  ;;  %v100_v34 = vld [vmem:[#allocation5 + $0xa8] sm:$0xff] }
  0x33   :  { %536 = vmatpush.msrb.mxu0 %v155_v53  ;;  %555 = vmatpush.msrb.mxu1 %v188_v54  ;;  %v199_v35 = vld [vmem:[#allocation5 + $0x3c0] sm:$0xff]  ;;  %v202_v36 = vld [vmem:[#allocation5 + $0x3d8] sm:$0xff]  ;;  %v169_v37 = vld [vmem:[#allocation5 + $0x2d0] sm:$0xff] }
  0x34   :  { %596 = vmatpush.msrb.mxu3 %v158_v55  ;;  %577 = vmatpush.msrb.mxu2 %v125_v56  ;;  %v167_v38 = vld [vmem:[#allocation5 + $0x2c0] sm:$0xff]  ;;  %v200_v39 = vld [vmem:[#allocation5 + $0x3c8] sm:$0xff]  ;;  %v170_v40 = vld [vmem:[#allocation5 + $0x2d8] sm:$0xff] }
  0x35   :  { %537 = vmatpush.msrb.mxu0 %v123_v57  ;;  %556 = vmatpush.msrb.mxu1 %v156_v58  ;;  %v137_v41 = vld [vmem:[#allocation5 + $0x1d0] sm:$0xff]  ;;  %v135_v42 = vld [vmem:[#allocation5 + $0x1c0] sm:$0xff]  ;;  %v168_v43 = vld [vmem:[#allocation5 + $0x2c8] sm:$0xff] }
  0x36   :  { %597 = vmatpush.msrb.mxu3 %v126_v59  ;;  %578 = vmatpush.msrb.mxu2 %v93_v60  ;;  %v138_v44 = vld [vmem:[#allocation5 + $0x1d8] sm:$0xff]  ;;  %v105_v45 = vld [vmem:[#allocation5 + $0xd0] sm:$0xff]  ;;  %v103_v46 = vld [vmem:[#allocation5 + $0xc0] sm:$0xff] }
  0x37   :  { %538 = vmatpush.msrb.mxu0 %v91_v61  ;;  %557 = vmatpush.msrb.mxu1 %v124_v62  ;;  %v136_v47 = vld [vmem:[#allocation5 + $0x1c8] sm:$0xff]  ;;  %v106_v48 = vld [vmem:[#allocation5 + $0xd8] sm:$0xff]  ;;  %v205_v49 = vld [vmem:[#allocation5 + $0x3f0] sm:$0xff] }
  0x38   :  { %598 = vmatpush.msrb.mxu3 %v94_v63  ;;  %1199 = vmatmul.msk.f32.vlgmr.msrb.gmra.mxu0 %vm279_vm0, %v1380_v16  ;;  %v104_v50 = vld [vmem:[#allocation5 + $0xc8] sm:$0xff]  ;;  %v203_v51 = vld [vmem:[#allocation5 + $0x3e0] sm:$0xff]  ;;  %v206_v52 = vld [vmem:[#allocation5 + $0x3f8] sm:$0xff] }
  0x39   :  { %1201 = vmatmul.msk.f32.vlgmr.msrb.gmra.mxu2 %vm279_vm0, %v1380_v16  ;;  %1202 = vmatmul.msk.f32.vlgmr.msrb.gmra.mxu3 %vm279_vm0, %v1380_v16  ;;  %v173_v53 = vld [vmem:[#allocation5 + $0x2f0] sm:$0xff]  ;;  %v171_v54 = vld [vmem:[#allocation5 + $0x2e0] sm:$0xff]  ;;  %v204_v55 = vld [vmem:[#allocation5 + $0x3e8] sm:$0xff] }
  0x3a   :  { %655 = vmatpush.msra.mxu2 %v193_v0  ;;  %558 = vmatpush.msrb.mxu1 %v92_v1  ;;  %v174_v56 = vld [vmem:[#allocation5 + $0x2f8] sm:$0xff]  ;;  %v141_v57 = vld [vmem:[#allocation5 + $0x1f0] sm:$0xff]  ;;  %v139_v58 = vld [vmem:[#allocation5 + $0x1e0] sm:$0xff] }
  0x3b   :  { %615 = vmatpush.msra.mxu0 %v191_v2  ;;  %675 = vmatpush.msra.mxu3 %v194_v3  ;;  %v172_v59 = vld [vmem:[#allocation5 + $0x2e8] sm:$0xff]  ;;  %v142_v60 = vld [vmem:[#allocation5 + $0x1f8] sm:$0xff]  ;;  %v109_v61 = vld [vmem:[#allocation5 + $0xf0] sm:$0xff] }
  0x3c   :  { %1200 = vmatmul.msk.f32.vlgmr.msrb.gmra.mxu1 %vm279_vm0, %v1380_v16  ;;  %656 = vmatpush.msra.mxu2 %v161_v4  ;;  %v107_v62 = vld [vmem:[#allocation5 + $0xe0] sm:$0xff]  ;;  %v140_v63 = vld [vmem:[#allocation5 + $0x1e8] sm:$0xff]  ;;  %v110_v0 = vld [vmem:[#allocation5 + $0xf8] sm:$0xff] }
  0x3d   :  { %616 = vmatpush.msra.mxu0 %v159_v5  ;;  %635 = vmatpush.msra.mxu1 %v192_v6  ;;  %v108_v1 = vld [vmem:[#allocation5 + $0xe8] sm:$0xff]  ;;  %v207_v2 = vld [vmem:[#allocation7] sm:$0xff] }
  0x3e   :  { %676 = vmatpush.msra.mxu3 %v162_v7  ;;  %657 = vmatpush.msra.mxu2 %v129_v8  ;;  %v215_v3 = vperm.slane %v207_v2, 0  ;;  %v216_v4 = vperm.slane %v207_v2, 1 }
  0x3f   :  { %617 = vmatpush.msra.mxu0 %v127_v9  ;;  %636 = vmatpush.msra.mxu1 %v160_v10  ;;  %v1446_v9 = vld [vmem:[#allocation8] sm:$0xff] }
  0x40   :  { %677 = vmatpush.msra.mxu3 %v130_v11  ;;  %658 = vmatpush.msra.mxu2 %v97_v12  ;;  %v217_v12 = vperm.slane %v207_v2, 2 }
  0x41   :  { %618 = vmatpush.msra.mxu0 %v95_v13  ;;  %637 = vmatpush.msra.mxu1 %v128_v14  ;;  %v218_v13 = vperm.slane %v207_v2, 3  ;;  %v1027_v14 = vperm.slane %v1446_v9, 0 }
  0x42   :  { %678 = vmatpush.msra.mxu3 %v98_v15  ;;  %1203 = vmatmul.msk.f32.vlgmr.msra.gmra.mxu0 %vm279_vm0, %v1380_v16  ;;  %v1028_v15 = vperm.slane %v1446_v9, 1 }
  0x43   :  { %1205 = vmatmul.msk.f32.vlgmr.msra.gmra.mxu2 %vm279_vm0, %v1380_v16  ;;  %1206 = vmatmul.msk.f32.vlgmr.msra.gmra.mxu3 %vm279_vm0, %v1380_v16 }
  0x44   :  { %735 = vmatpush.msrb.mxu2 %v197_v17  ;;  %638 = vmatpush.msra.mxu1 %v96_v18 }
  0x45   :  { %695 = vmatpush.msrb.mxu0 %v195_v19  ;;  %755 = vmatpush.msrb.mxu3 %v198_v20  ;;  %v219_v20 = vperm.slane %v207_v2, 4 }
  0x46   :  { %1204 = vmatmul.msk.f32.vlgmr.msra.gmra.mxu1 %vm279_vm0, %v1380_v16  ;;  %736 = vmatpush.msrb.mxu2 %v165_v21 }
  0x47   :  { %696 = vmatpush.msrb.mxu0 %v163_v22  ;;  %715 = vmatpush.msrb.mxu1 %v196_v23 }
  0x48   :  { %756 = vmatpush.msrb.mxu3 %v166_v24  ;;  %737 = vmatpush.msrb.mxu2 %v133_v25  ;;  %v1029_v25 = vperm.slane %v1446_v9, 2 }
  0x49   :  { %697 = vmatpush.msrb.mxu0 %v131_v26  ;;  %716 = vmatpush.msrb.mxu1 %v164_v27  ;;  %v220_v27 = vperm.slane %v207_v2, 5 }
  0x4a   :  { %757 = vmatpush.msrb.mxu3 %v134_v28  ;;  %738 = vmatpush.msrb.mxu2 %v101_v29 }
  0x4b   :  { %698 = vmatpush.msrb.mxu0 %v99_v30  ;;  %717 = vmatpush.msrb.mxu1 %v132_v31  ;;  %v1030_v30 = vperm.slane %v1446_v9, 3 }
  0x4c   :  { %758 = vmatpush.msrb.mxu3 %v102_v32  ;;  %1207 = vmatmul.msk.f32.vlgmr.msrb.gmra.mxu0 %vm279_vm0, %v1380_v16  ;;  %v1031_v32 = vperm.slane %v1446_v9, 4 }
  0x4d   :  { %1209 = vmatmul.msk.f32.vlgmr.msrb.gmra.mxu2 %vm279_vm0, %v1380_v16  ;;  %1210 = vmatmul.msk.f32.vlgmr.msrb.gmra.mxu3 %vm279_vm0, %v1380_v16 }
  0x4e   :  { %815 = vmatpush.msra.mxu2 %v201_v33  ;;  %718 = vmatpush.msrb.mxu1 %v100_v34 }
  0x4f   :  { %775 = vmatpush.msra.mxu0 %v199_v35  ;;  %835 = vmatpush.msra.mxu3 %v202_v36  ;;  %v221_v35 = vperm.slane %v207_v2, 6  ;;  %v222_v36 = vperm.slane %v207_v2, 7 }
  0x50   :  { %1208 = vmatmul.msk.f32.vlgmr.msrb.gmra.mxu1 %vm279_vm0, %v1380_v16  ;;  %816 = vmatpush.msra.mxu2 %v169_v37 }
  0x51   :  { %776 = vmatpush.msra.mxu0 %v167_v38  ;;  %795 = vmatpush.msra.mxu1 %v200_v39 }
  0x52   :  { %836 = vmatpush.msra.mxu3 %v170_v40  ;;  %817 = vmatpush.msra.mxu2 %v137_v41  ;;  %v1453_v41 = vld [vmem:[#allocation7 + $0x8] sm:$0xff] }
  0x53   :  { %777 = vmatpush.msra.mxu0 %v135_v42  ;;  %796 = vmatpush.msra.mxu1 %v168_v43 }
  0x54   :  { %837 = vmatpush.msra.mxu3 %v138_v44  ;;  %818 = vmatpush.msra.mxu2 %v105_v45 }
  0x55   :  { %778 = vmatpush.msra.mxu0 %v103_v46  ;;  %797 = vmatpush.msra.mxu1 %v136_v47  ;;  %v1032_v46 = vperm.slane %v1446_v9, 5 }
  0x56   :  { %838 = vmatpush.msra.mxu3 %v106_v48  ;;  %1211 = vmatmul.msk.f32.vlgmr.msra.gmra.mxu0 %vm279_vm0, %v1380_v16 }
  0x57   :  { %1213 = vmatmul.msk.f32.vlgmr.msra.gmra.mxu2 %vm279_vm0, %v1380_v16  ;;  %1214 = vmatmul.msk.f32.vlgmr.msra.gmra.mxu3 %vm279_vm0, %v1380_v16 }
  0x58   :  { %895 = vmatpush.msrb.mxu2 %v205_v49  ;;  %798 = vmatpush.msra.mxu1 %v104_v50  ;;  %v223_v50 = vperm.slane %v1453_v41, 0 }
  0x59   :  { %855 = vmatpush.msrb.mxu0 %v203_v51  ;;  %915 = vmatpush.msrb.mxu3 %v206_v52 }
  0x5a   :  { %1212 = vmatmul.msk.f32.vlgmr.msra.gmra.mxu1 %vm279_vm0, %v1380_v16  ;;  %896 = vmatpush.msrb.mxu2 %v173_v53 }
  0x5b   :  { %856 = vmatpush.msrb.mxu0 %v171_v54  ;;  %875 = vmatpush.msrb.mxu1 %v204_v55 }
  0x5c   :  { %916 = vmatpush.msrb.mxu3 %v174_v56  ;;  %897 = vmatpush.msrb.mxu2 %v141_v57  ;;  %v1033_v56 = vperm.slane %v1446_v9, 6  ;;  %v1034_v57 = vperm.slane %v1446_v9, 7  ;;  %v225_v9 = vperm.slane %v1453_v41, 2 }
  0x5d   :  { %857 = vmatpush.msrb.mxu0 %v139_v58  ;;  %876 = vmatpush.msrb.mxu1 %v172_v59  ;;  %v1459_v58 = vld [vmem:[#allocation8 + $0x8] sm:$0xff] }
  0x5e   :  { %917 = vmatpush.msrb.mxu3 %v142_v60  ;;  %898 = vmatpush.msrb.mxu2 %v109_v61 }
  0x5f   :  { %858 = vmatpush.msrb.mxu0 %v107_v62  ;;  %877 = vmatpush.msrb.mxu1 %v140_v63 }
  0x60   :  { %918 = vmatpush.msrb.mxu3 %v110_v0  ;;  %1215 = vmatmul.msk.f32.vlgmr.msrb.gmra.mxu0 %vm279_vm0, %v1380_v16 }
  0x61   :  { %1217 = vmatmul.msk.f32.vlgmr.msrb.gmra.mxu2 %vm279_vm0, %v1380_v16  ;;  %1218 = vmatmul.msk.f32.vlgmr.msrb.gmra.mxu3 %vm279_vm0, %v1380_v16 }
  0x62   :  { %878 = vmatpush.msrb.mxu1 %v108_v1  ;;  %v224_v1 = vperm.slane %v1453_v41, 1 }
  0x63   :  { %1216 = vmatmul.msk.f32.vlgmr.msrb.gmra.mxu1 %vm279_vm0, %v1380_v16 }
  0x98   :  { %v300_v5 = vpop.f32.mrf.mxu0  ;;  %v320_v6 = vpop.f32.mrf.mxu1 }
  0x99   :  { %v301_v7 = vadd.f32 %v300_v5, %v215_v3  ;;  %v321_v8 = vadd.f32 %v320_v6, %v216_v4  ;;  %v1035_v4 = vperm.slane %v1459_v58, 0 }
  0x9b   :  { %vm923_vm1 = vcmp.gt.f32.partialorder %v301_v7, 0.0  ;;  %v955_v10 = vmul.f32 0.01, %v301_v7  ;;  %vm924_vm2 = vcmp.gt.f32.partialorder %v321_v8, 0.0  ;;  %v956_v11 = vmul.f32 0.01, %v321_v8 }
  0x9d   :  { %v987_v16 = vsel %vm923_vm1, %v301_v7, %v955_v10  ;;  %v988_v17 = vsel %vm924_vm2, %v321_v8, %v956_v11  ;;  %v226_v10 = vperm.slane %v1453_v41, 3 }
  0x9e   :  { %v1091_v23 = vmul.f32 %v1027_v14, %v987_v16  ;;  %v1092_v24 = vmul.f32 %v1028_v15, %v988_v17  ;;  %v1036_v15 = vperm.slane %v1459_v58, 1  ;;  %v227_v16 = vperm.slane %v1453_v41, 4 }
  0x9f   :  { %v340_v18 = vpop.f32.mrf.mxu2  ;;  %v360_v19 = vpop.f32.mrf.mxu3 }
  0xa0   :  { %v341_v21 = vadd.f32 %v340_v18, %v217_v12  ;;  %v361_v22 = vadd.f32 %v360_v19, %v218_v13  ;;  %v1123_v37 = vadd.f32 %v1092_v24, %v1091_v23 }
  0xa1   :  { %v380_v26 = vpop.f32.mrf.mxu0 }
  0xa2   :  { %vm925_vm3 = vcmp.gt.f32.partialorder %v341_v21, 0.0  ;;  %v957_v28 = vmul.f32 0.01, %v341_v21  ;;  %vm926_vm4 = vcmp.gt.f32.partialorder %v361_v22, 0.0  ;;  %v958_v29 = vmul.f32 0.01, %v361_v22 }
  0xa3   :  { %v381_v31 = vadd.f32 %v380_v26, %v219_v20  ;;  %v1037_v26 = vperm.slane %v1459_v58, 2 }
  0xa4   :  { %v989_v33 = vsel %vm925_vm3, %v341_v21, %v957_v28  ;;  %v990_v34 = vsel %vm926_vm4, %v361_v22, %v958_v29 }
  0xa5   :  { %v1093_v38 = vmul.f32 %v1029_v25, %v989_v33  ;;  %vm927_vm5 = vcmp.gt.f32.partialorder %v381_v31, 0.0  ;;  %v959_v39 = vmul.f32 0.01, %v381_v31  ;;  %v400_v40 = vpop.f32.mrf.mxu1  ;;  %v1094_v44 = vmul.f32 %v1030_v30, %v990_v34 }
  0xa6   :  { %v401_v42 = vadd.f32 %v400_v40, %v220_v27  ;;  %v228_v33 = vperm.slane %v1453_v41, 5  ;;  %v1471_v40 = vld [vmem:[#allocation7 + $0x10] sm:$0xff] }
  0xa7   :  { %v1124_v43 = vadd.f32 %v1123_v37, %v1093_v38  ;;  %v991_v45 = vsel %vm927_vm5, %v381_v31, %v959_v39  ;;  %v1038_v31 = vperm.slane %v1459_v58, 3 }
  0xa8   :  { %vm928_vm6 = vcmp.gt.f32.partialorder %v401_v42, 0.0  ;;  %v960_v47 = vmul.f32 0.01, %v401_v42  ;;  %v420_v48 = vpop.f32.mrf.mxu2  ;;  %v440_v49 = vpop.f32.mrf.mxu3  ;;  %v1095_v52 = vmul.f32 %v1031_v32, %v991_v45 }
  0xa9   :  { %v1125_v51 = vadd.f32 %v1124_v43, %v1094_v44  ;;  %v421_v53 = vadd.f32 %v420_v48, %v221_v35  ;;  %v441_v54 = vadd.f32 %v440_v49, %v222_v36  ;;  %v1039_v36 = vperm.slane %v1459_v58, 4 }
  0xaa   :  { %v992_v55 = vsel %vm928_vm6, %v401_v42, %v960_v47  ;;  %v229_v43 = vperm.slane %v1453_v41, 6  ;;  %v230_v44 = vperm.slane %v1453_v41, 7  ;;  %v1040_v49 = vperm.slane %v1459_v58, 5 }
  0xab   :  { %v1126_v59 = vadd.f32 %v1125_v51, %v1095_v52  ;;  %v1096_v60 = vmul.f32 %v1032_v46, %v992_v55  ;;  %vm929_vm7 = vcmp.gt.f32.partialorder %v421_v53, 0.0  ;;  %v961_v61 = vmul.f32 0.01, %v421_v53  ;;  %v460_v62 = vpop.f32.mrf.mxu0 }
  0xac   :  { %vm930_vm8 = vcmp.gt.f32.partialorder %v441_v54, 0.0  ;;  %v962_v63 = vmul.f32 0.01, %v441_v54  ;;  %v461_v0 = vadd.f32 %v460_v62, %v223_v50  ;;  %v231_v50 = vperm.slane %v1471_v40, 0 }
  0xad   :  { %v1127_v2 = vadd.f32 %v1126_v59, %v1096_v60  ;;  %v993_v3 = vsel %vm929_vm7, %v421_v53, %v961_v61  ;;  %v1041_v41 = vperm.slane %v1459_v58, 6  ;;  %v1478_v61 = vld [vmem:[#allocation8 + $0x10] sm:$0xff] }
  0xae   :  { %v1097_v5 = vmul.f32 %v1033_v56, %v993_v3  ;;  %v994_v6 = vsel %vm930_vm8, %v441_v54, %v962_v63  ;;  %vm931_vm9 = vcmp.gt.f32.partialorder %v461_v0, 0.0  ;;  %v963_v7 = vmul.f32 0.01, %v461_v0 }
  0xaf   :  { %v480_v8 = vpop.f32.mrf.mxu1  ;;  %v1098_v12 = vmul.f32 %v1034_v57, %v994_v6 }
  0xb0   :  { %v1128_v11 = vadd.f32 %v1127_v2, %v1097_v5  ;;  %v995_v13 = vsel %vm931_vm9, %v461_v0, %v963_v7  ;;  %v481_v14 = vadd.f32 %v480_v8, %v224_v1  ;;  %v1042_v2 = vperm.slane %v1459_v58, 7 }
  0xb1   :  { %v1099_v18 = vmul.f32 %v1035_v4, %v995_v13  ;;  %v232_v4 = vperm.slane %v1471_v40, 1  ;;  %v1043_v7 = vperm.slane %v1478_v61, 0  ;;  %v234_v13 = vperm.slane %v1471_v40, 3 }
  0xb2   :  { %v1129_v17 = vadd.f32 %v1128_v11, %v1098_v12  ;;  %vm932_vm10 = vcmp.gt.f32.partialorder %v481_v14, 0.0  ;;  %v964_v19 = vmul.f32 0.01, %v481_v14  ;;  %v500_v20 = vpop.f32.mrf.mxu2  ;;  %v520_v21 = vpop.f32.mrf.mxu3  ;;  %v233_v12 = vperm.slane %v1471_v40, 2 }
  0xb3   :  { %v501_v22 = vadd.f32 %v500_v20, %v225_v9  ;;  %v521_v23 = vadd.f32 %v520_v21, %v226_v10 }
  0xb4   :  { %v1130_v24 = vadd.f32 %v1129_v17, %v1099_v18  ;;  %v996_v25 = vsel %vm932_vm10, %v481_v14, %v964_v19  ;;  %v1044_v17 = vperm.slane %v1478_v61, 1  ;;  %v235_v18 = vperm.slane %v1471_v40, 4 }
  0xb5   :  { %v1100_v27 = vmul.f32 %v1036_v15, %v996_v25  ;;  %vm933_vm11 = vcmp.gt.f32.partialorder %v501_v22, 0.0  ;;  %v965_v28 = vmul.f32 0.01, %v501_v22  ;;  %vm934_vm12 = vcmp.gt.f32.partialorder %v521_v23, 0.0  ;;  %v540_v29 = vpop.f32.mrf.mxu0 }
  0xb6   :  { %v966_v30 = vmul.f32 0.01, %v521_v23  ;;  %v541_v32 = vadd.f32 %v540_v29, %v227_v16 }
  0xb7   :  { %v1131_v34 = vadd.f32 %v1130_v24, %v1100_v27  ;;  %v997_v35 = vsel %vm933_vm11, %v501_v22, %v965_v28  ;;  %v1045_v28 = vperm.slane %v1478_v61, 2 }
  0xb8   :  { %v1101_v37 = vmul.f32 %v1037_v26, %v997_v35  ;;  %v998_v38 = vsel %vm934_vm12, %v521_v23, %v966_v30  ;;  %vm935_vm13 = vcmp.gt.f32.partialorder %v541_v32, 0.0  ;;  %v967_v39 = vmul.f32 0.01, %v541_v32 }
  0xb9   :  { %v560_v42 = vpop.f32.mrf.mxu1  ;;  %v1102_v46 = vmul.f32 %v1038_v31, %v998_v38  ;;  %v236_v35 = vperm.slane %v1471_v40, 5  ;;  %v1047_v38 = vperm.slane %v1478_v61, 4 }
  0xba   :  { %v1132_v45 = vadd.f32 %v1131_v34, %v1101_v37  ;;  %v999_v47 = vsel %vm935_vm13, %v541_v32, %v967_v39  ;;  %v561_v48 = vadd.f32 %v560_v42, %v228_v33  ;;  %v1046_v33 = vperm.slane %v1478_v61, 3 }
  0xbb   :  { %v1103_v52 = vmul.f32 %v1039_v36, %v999_v47  ;;  %v238_v47 = vperm.slane %v1471_v40, 7 }
  0xbc   :  { %v1133_v51 = vadd.f32 %v1132_v45, %v1102_v46  ;;  %vm936_vm14 = vcmp.gt.f32.partialorder %v561_v48, 0.0  ;;  %v968_v53 = vmul.f32 0.01, %v561_v48  ;;  %v580_v54 = vpop.f32.mrf.mxu2  ;;  %v600_v55 = vpop.f32.mrf.mxu3  ;;  %v237_v46 = vperm.slane %v1471_v40, 6 }
  0xbd   :  { %v581_v56 = vadd.f32 %v580_v54, %v229_v43  ;;  %v601_v57 = vadd.f32 %v600_v55, %v230_v44  ;;  %v1491_v44 = vld [vmem:[#allocation7 + $0x18] sm:$0xff]  ;;  %v1049_v40 = vperm.slane %v1478_v61, 6 }
  0xbe   :  { %v1134_v59 = vadd.f32 %v1133_v51, %v1103_v52  ;;  %v1000_v60 = vsel %vm936_vm14, %v561_v48, %v968_v53  ;;  %v1048_v52 = vperm.slane %v1478_v61, 5  ;;  %v239_v53 = vperm.slane %v1491_v44, 0 }
  0xbf   :  { %v1104_v62 = vmul.f32 %v1040_v49, %v1000_v60  ;;  %vm937_vm15 = vcmp.gt.f32.partialorder %v581_v56, 0.0  ;;  %v969_v63 = vmul.f32 0.01, %v581_v56  ;;  %vm938_vm0 = vcmp.gt.f32.partialorder %v601_v57, 0.0  ;;  %v620_v0 = vpop.f32.mrf.mxu0 }
  0xc0   :  { %v970_v1 = vmul.f32 0.01, %v601_v57  ;;  %v621_v3 = vadd.f32 %v620_v0, %v231_v50  ;;  %v1498_v0 = vld [vmem:[#allocation8 + $0x18] sm:$0xff] }
  0xc1   :  { %v1135_v5 = vadd.f32 %v1134_v59, %v1104_v62  ;;  %v1001_v6 = vsel %vm937_vm15, %v581_v56, %v969_v63 }
  0xc2   :  { %v1105_v8 = vmul.f32 %v1041_v41, %v1001_v6  ;;  %v1002_v9 = vsel %vm938_vm0, %v601_v57, %v970_v1  ;;  %vm939_vm1 = vcmp.gt.f32.partialorder %v621_v3, 0.0  ;;  %v971_v10 = vmul.f32 0.01, %v621_v3 }
  0xc3   :  { %v640_v11 = vpop.f32.mrf.mxu1  ;;  %v1106_v15 = vmul.f32 %v1042_v2, %v1002_v9 }
  0xc4   :  { %v1136_v14 = vadd.f32 %v1135_v5, %v1105_v8  ;;  %v1003_v16 = vsel %vm939_vm1, %v621_v3, %v971_v10  ;;  %v641_v58 = vadd.f32 %v640_v11, %v232_v4  ;;  %v1050_v5 = vperm.slane %v1478_v61, 7 }
  0xc5   :  { %v1107_v20 = vmul.f32 %v1043_v7, %v1003_v16  ;;  %v240_v7 = vperm.slane %v1491_v44, 1  ;;  %v1051_v10 = vperm.slane %v1498_v0, 0  ;;  %v242_v16 = vperm.slane %v1491_v44, 3 }
  0xc6   :  { %v1137_v19 = vadd.f32 %v1136_v14, %v1106_v15  ;;  %vm940_vm2 = vcmp.gt.f32.partialorder %v641_v58, 0.0  ;;  %v972_v21 = vmul.f32 0.01, %v641_v58  ;;  %v660_v22 = vpop.f32.mrf.mxu2  ;;  %v680_v23 = vpop.f32.mrf.mxu3  ;;  %v241_v15 = vperm.slane %v1491_v44, 2 }
  0xc7   :  { %v661_v24 = vadd.f32 %v660_v22, %v233_v12  ;;  %v681_v25 = vadd.f32 %v680_v23, %v234_v13 }
  0xc8   :  { %v1138_v26 = vadd.f32 %v1137_v19, %v1107_v20  ;;  %v1004_v27 = vsel %vm940_vm2, %v641_v58, %v972_v21  ;;  %v1052_v19 = vperm.slane %v1498_v0, 1  ;;  %v243_v20 = vperm.slane %v1491_v44, 4 }
  0xc9   :  { %v1108_v29 = vmul.f32 %v1044_v17, %v1004_v27  ;;  %vm941_vm3 = vcmp.gt.f32.partialorder %v661_v24, 0.0  ;;  %v973_v30 = vmul.f32 0.01, %v661_v24  ;;  %vm942_vm4 = vcmp.gt.f32.partialorder %v681_v25, 0.0  ;;  %v700_v31 = vpop.f32.mrf.mxu0 }
  0xca   :  { %v974_v32 = vmul.f32 0.01, %v681_v25  ;;  %v701_v34 = vadd.f32 %v700_v31, %v235_v18  ;;  %v244_v31 = vperm.slane %v1491_v44, 5 }
  0xcb   :  { %v1139_v36 = vadd.f32 %v1138_v26, %v1108_v29  ;;  %v1005_v37 = vsel %vm941_vm3, %v661_v24, %v973_v30  ;;  %v1053_v30 = vperm.slane %v1498_v0, 2 }
  0xcc   :  { %v1109_v39 = vmul.f32 %v1045_v28, %v1005_v37  ;;  %v1006_v42 = vsel %vm942_vm4, %v681_v25, %v974_v32  ;;  %vm943_vm5 = vcmp.gt.f32.partialorder %v701_v34, 0.0  ;;  %v975_v43 = vmul.f32 0.01, %v701_v34 }
  0xcd   :  { %v720_v45 = vpop.f32.mrf.mxu1  ;;  %v1110_v49 = vmul.f32 %v1046_v33, %v1006_v42  ;;  %v1055_v42 = vperm.slane %v1498_v0, 4  ;;  %vm1178_vm4 = vcmask 7168  }
  0xce   :  { %v1140_v48 = vadd.f32 %v1139_v36, %v1109_v39  ;;  %v1007_v50 = vsel %vm943_vm5, %v701_v34, %v975_v43  ;;  %v721_v51 = vadd.f32 %v720_v45, %v236_v35  ;;  %v1054_v36 = vperm.slane %v1498_v0, 3 }
  0xcf   :  { %v1111_v55 = vmul.f32 %v1047_v38, %v1007_v50  ;;  %v246_v50 = vperm.slane %v1491_v44, 7 }
  0xd0   :  { %v1141_v54 = vadd.f32 %v1140_v48, %v1110_v49  ;;  %vm944_vm6 = vcmp.gt.f32.partialorder %v721_v51, 0.0  ;;  %v976_v56 = vmul.f32 0.01, %v721_v51  ;;  %v740_v57 = vpop.f32.mrf.mxu2  ;;  %v760_v59 = vpop.f32.mrf.mxu3  ;;  %v245_v49 = vperm.slane %v1491_v44, 6 }
  0xd1   :  { %v741_v60 = vadd.f32 %v740_v57, %v237_v46  ;;  %v761_v41 = vadd.f32 %v760_v59, %v238_v47 }
  0xd2   :  { %v1142_v62 = vadd.f32 %v1141_v54, %v1111_v55  ;;  %v1008_v63 = vsel %vm944_vm6, %v721_v51, %v976_v56  ;;  %v1056_v54 = vperm.slane %v1498_v0, 5 }
  0xd3   :  { %v1112_v1 = vmul.f32 %v1048_v52, %v1008_v63  ;;  %vm945_vm7 = vcmp.gt.f32.partialorder %v741_v60, 0.0  ;;  %v977_v2 = vmul.f32 0.01, %v741_v60  ;;  %vm946_vm8 = vcmp.gt.f32.partialorder %v761_v41, 0.0  ;;  %v780_v3 = vpop.f32.mrf.mxu0 }
  0xd4   :  { %v978_v4 = vmul.f32 0.01, %v761_v41  ;;  %v781_v6 = vadd.f32 %v780_v3, %v239_v53 }
  0xd5   :  { %v1143_v8 = vadd.f32 %v1142_v62, %v1112_v1  ;;  %v1009_v9 = vsel %vm945_vm7, %v741_v60, %v977_v2 }
  0xd6   :  { %v1113_v11 = vmul.f32 %v1049_v40, %v1009_v9  ;;  %v1010_v12 = vsel %vm946_vm8, %v761_v41, %v978_v4  ;;  %vm947_vm9 = vcmp.gt.f32.partialorder %v781_v6, 0.0  ;;  %v979_v13 = vmul.f32 0.01, %v781_v6 }
  0xd7   :  { %v800_v14 = vpop.f32.mrf.mxu1  ;;  %v1114_v17 = vmul.f32 %v1050_v5, %v1010_v12  ;;  %v1057_v40 = vperm.slane %v1498_v0, 6  ;;  %v1058_v4 = vperm.slane %v1498_v0, 7  ;;  %v1157_v12 = vstv %s1526_s4 }
  0xd8   :  { %v1144_v58 = vadd.f32 %v1143_v8, %v1113_v11  ;;  %v1011_v18 = vsel %vm947_vm9, %v781_v6, %v979_v13  ;;  %v801_v61 = vadd.f32 %v800_v14, %v240_v7 }
  0xd9   :  { %v1115_v22 = vmul.f32 %v1051_v10, %v1011_v18 }
  0xda   :  { %v1145_v21 = vadd.f32 %v1144_v58, %v1114_v17  ;;  %vm948_vm10 = vcmp.gt.f32.partialorder %v801_v61, 0.0  ;;  %v980_v23 = vmul.f32 0.01, %v801_v61  ;;  %v820_v24 = vpop.f32.mrf.mxu2  ;;  %v840_v25 = vpop.f32.mrf.mxu3 }
  0xdb   :  { %v821_v26 = vadd.f32 %v820_v24, %v241_v15  ;;  %v841_v27 = vadd.f32 %v840_v25, %v242_v16 }
  0xdc   :  { %v1146_v28 = vadd.f32 %v1145_v21, %v1115_v22  ;;  %v1012_v29 = vsel %vm948_vm10, %v801_v61, %v980_v23 }
  0xdd   :  { %v1116_v32 = vmul.f32 %v1052_v19, %v1012_v29  ;;  %vm949_vm11 = vcmp.gt.f32.partialorder %v821_v26, 0.0  ;;  %v981_v33 = vmul.f32 0.01, %v821_v26  ;;  %vm950_vm12 = vcmp.gt.f32.partialorder %v841_v27, 0.0  ;;  %v860_v34 = vpop.f32.mrf.mxu0 }
  0xde   :  { %v982_v35 = vmul.f32 0.01, %v841_v27  ;;  %v861_v37 = vadd.f32 %v860_v34, %v243_v20 }
  0xdf   :  { %v1147_v38 = vadd.f32 %v1146_v28, %v1116_v32  ;;  %v1013_v39 = vsel %vm949_vm11, %v821_v26, %v981_v33 }
  0xe0   :  { %v1117_v43 = vmul.f32 %v1053_v30, %v1013_v39  ;;  %v1014_v45 = vsel %vm950_vm12, %v841_v27, %v982_v35  ;;  %vm951_vm13 = vcmp.gt.f32.partialorder %v861_v37, 0.0  ;;  %v983_v46 = vmul.f32 0.01, %v861_v37  ;;  %v880_v47 = vpop.f32.mrf.mxu1 }
  0xe1   :  { %v881_v48 = vadd.f32 %v880_v47, %v244_v31  ;;  %v1118_v52 = vmul.f32 %v1054_v36, %v1014_v45 }
  0xe2   :  { %v1148_v51 = vadd.f32 %v1147_v38, %v1117_v43  ;;  %v1015_v53 = vsel %vm951_vm13, %v861_v37, %v983_v46 }
  0xe3   :  { %vm952_vm14 = vcmp.gt.f32.partialorder %v881_v48, 0.0  ;;  %v984_v55 = vmul.f32 0.01, %v881_v48  ;;  %v1119_v56 = vmul.f32 %v1055_v42, %v1015_v53 }
  0xe4   :  { %v900_v57 = vpop.f32.mrf.mxu2  ;;  %v920_v59 = vpop.f32.mrf.mxu3  ;;  %v1149_v60 = vadd.f32 %v1148_v51, %v1118_v52 }
  0xe5   :  { %v1016_v41 = vsel %vm952_vm14, %v881_v48, %v984_v55  ;;  %v901_v62 = vadd.f32 %v900_v57, %v245_v49  ;;  %v921_v63 = vadd.f32 %v920_v59, %v246_v50 }
  0xe6   :  { %v1120_v1 = vmul.f32 %v1056_v54, %v1016_v41  ;;  %v1150_v2 = vadd.f32 %v1149_v60, %v1119_v56 }
  0xe7   :  { %vm953_vm15 = vcmp.gt.f32.partialorder %v901_v62, 0.0  ;;  %v985_v44 = vmul.f32 0.01, %v901_v62  ;;  %vm954_vm0 = vcmp.gt.f32.partialorder %v921_v63, 0.0  ;;  %v986_v3 = vmul.f32 0.01, %v921_v63 }
  0xe8   :  { %v1151_v5 = vadd.f32 %v1150_v2, %v1120_v1 }
  0xe9   :  { %v1017_v6 = vsel %vm953_vm15, %v901_v62, %v985_v44  ;;  %v1018_v7 = vsel %vm954_vm0, %v921_v63, %v986_v3 }
  0xea   :  { %v1121_v8 = vmul.f32 %v1057_v40, %v1017_v6  ;;  %v1122_v9 = vmul.f32 %v1058_v4, %v1018_v7 }
  0xec   :  { %v1152_v10 = vadd.f32 %v1151_v5, %v1121_v8 }
  0xee   :  { %v1153_v11 = vadd.f32 %v1152_v10, %v1122_v9 }
  0xf0   :  { %1154 = vadd.xlane.f32.xlu0 %v1153_v11 }
 0x163   :  { %v1155_v13 = vpop.xlane.xlu0 %1154 }
 0x164   :  { %v1158_v14 = vadd.f32 %v1157_v12, %v1155_v13 }
 0x166   :  { %v1219_v15 = vmul.f32 -1.442695, %v1158_v14 }
 0x168   :  { %1226 = vpow2.f32 %v1219_v15 }
 0x16e   :  { %v1227_v16 = vpop.eup %1226 }
 0x16f   :  { %v1162_v58 = vadd.f32 1.0, %v1227_v16 }
 0x171   :  { %1228 = vrcp.f32 %v1162_v58  ;;  %v1174_v61 = vand.u32 2147483648, %v1162_v58  ;;  %v1172_v20 = vand.u32 2147483647, %v1162_v58  ;;  %vm1168_vm2 = vweird.f32 %v1162_v58 }
 0x173   :  { %v1175_v22 = vor.u32 1.1754944e-38, %v1174_v61  ;;  %vm1173_vm5 = vcmp.eq.f32.partialorder %v1172_v20, 8.507059e+37 }
 0x177   :  { %v1229_v0 = vpop.eup %1228 }
 0x178   :  { %v1164_v17 = vmul.f32 %v1229_v0, %v1162_v58  ;;  %vm1169_vm1 = vweird.f32 %v1229_v0 }
 0x179   :  { %vm1170_vm3 = vmor %vm1168_vm2, %vm1169_vm1 }
 0x17a   :  { %v1165_v18 = vsub.f32 1.0, %v1164_v17 }
 0x17c   :  { %v1166_v19 = vmul.f32 %v1229_v0, %v1165_v18 }
 0x17e   :  { %v1167_v21 = vadd.f32 %v1229_v0, %v1166_v19 }
 0x180   :  { %v1171_v23 = vsel %vm1170_vm3, %v1229_v0, %v1167_v21 }
 0x181   :  { %v1176_v24 = vsel %vm1173_vm5, %v1175_v22, %v1171_v23 }
 0x182   :  { %1179 = vst.msk [vmem:[%s1527_s5] sm:$0xff] %vm1178_vm4, %v1176_v24 }
 0x183   :  { %1184 = vsyncpa [#allocation4], 1 }
 0x184   :  { %1185 = vsyncpa [#allocation6], 1 }
 0x185   :  { %1186 = vsyncpa [#allocation9], 1 }

</bundles_post_ra>
